<compile_context>
chip_gen: v7x
topology: tpu7x:2x2x1
jax: 0.10.0
libtpu: 0.0.40
codegen_flags: <defaults>
</compile_context>

<pallas_src>
import functools

import jax
import jax.numpy as jnp
from jax import lax
from jax.experimental import pallas as pl
from jax.experimental.pallas import tpu as pltpu


def qfunc_kernel(obs_ref, act_ref, w1o_ref, w1a_ref, b1_ref,
                 w2_ref, b2_ref, w3_ref, b3_ref, out_ref):
    # obs_ref: (bt, obs_dim) f32, act_ref: (bt, act_dim) f32  (batch tile)
    # w1o/w1a: (h1, obs_dim)/(h1, act_dim) bf16, w2: (h2, h1) bf16
    # b1/b2:   (h*, 1) f32 columns, w3: (h2, 1) f32 column, b3: (1,) f32 in SMEM
    dn = (((1,), (1,)), ((), ()))  # contract last dims; Mosaic adds the cheap XLU transpose

    # Layer 1: Linear(obs_dim+act_dim -> h1) + ReLU, concat folded into two dots.
    xo = obs_ref[...].astype(jnp.bfloat16)
    xa = act_ref[...].astype(jnp.bfloat16)
    h = lax.dot_general(w1o_ref[...], xo, dn, preferred_element_type=jnp.float32)
    h = h + lax.dot_general(w1a_ref[...], xa, dn, preferred_element_type=jnp.float32)
    h = jnp.maximum(h + b1_ref[...], 0.0)                       # (h1, bt) f32

    # Layer 2: Linear(h1 -> h2) + ReLU.
    h = jnp.dot(w2_ref[...], h.astype(jnp.bfloat16),
                preferred_element_type=jnp.float32)
    h = jnp.maximum(h + b2_ref[...], 0.0)                       # (h2, bt) f32

    # Layer 3: Linear(h2 -> 1), Identity output.  M=1 -> VPU mul + sublane
    # reduction (MXU pass saved); stays f32 for the value head.
    q = jnp.sum(h * w3_ref[...], axis=0, keepdims=True) + b3_ref[0]
    out_ref[...] = q.astype(out_ref.dtype)                      # lane-dense (1, bt)


def _round_up(x, m):
    return (x + m - 1) // m * m


def _choose_tile(Bp, batch_tile):
    """Bp is a multiple of 128.  Pick a tile (multiple of 128) that divides Bp;
    small batches -> single step; large batches -> prefer an even grid (v7x 2-TC
    balance) unless it would more than halve the tile."""
    if Bp <= batch_tile:
        return Bp
    cands = [t for t in range(batch_tile, 127, -128) if Bp % t == 0]
    best = cands[0]
    for t in cands:
        if (Bp // t) % 2 == 0 and 2 * t >= best:
            return t
    return best


def prepare_params(params, obs_dim):
    """One-time prep (re-run after each optimizer step): split W1 at the
    obs/act boundary, pre-cast MXU weights to bf16, reshape biases to
    broadcastable f32 columns.  Keep the f32 masters for the optimizer."""
    w1, b1, w2, b2, w3, b3 = params
    h1, h2 = w1.shape[0], w2.shape[0]
    w1o = w1[:, :obs_dim].astype(jnp.bfloat16)     # (h1, obs_dim)
    w1a = w1[:, obs_dim:].astype(jnp.bfloat16)     # (h1, act_dim)
    b1c = b1.reshape(h1, 1).astype(jnp.float32)
    w2b = w2.astype(jnp.bfloat16)                  # (h2, h1)
    b2c = b2.reshape(h2, 1).astype(jnp.float32)
    w3c = w3.reshape(h2, 1).astype(jnp.float32)    # f32 column for VPU epilogue
    b3s = b3.reshape(1).astype(jnp.float32)        # scalar via SMEM
    return (w1o, w1a, b1c, w2b, b2c, w3c, b3s)


@functools.partial(jax.jit, static_argnames=("batch_tile",))
def mlp_qfunction(obs, act, prepared, *, batch_tile=512):
    """Pallas forward of MLPQFunction. Returns q with shape (B,)."""
    w1o, w1a, b1c, w2b, b2c, w3c, b3s = prepared
    B, obs_dim = obs.shape
    act_dim = act.shape[1]
    in_dim = obs_dim + act_dim
    h1 = w1o.shape[0]
    h2 = w2b.shape[0]

    assert batch_tile % 128 == 0
    Bp = _round_up(B, 128)             # pad batch to a lane multiple only
    bt = _choose_tile(Bp, batch_tile)

    obs = obs.astype(jnp.float32)
    act = act.astype(jnp.float32)
    if Bp != B:
        obs = jnp.pad(obs, ((0, Bp - B), (0, 0)))
        act = jnp.pad(act, ((0, Bp - B), (0, 0)))

    grid = (Bp // bt,)
    flops = 2 * Bp * (in_dim * h1 + h1 * h2 + h2)
    bytes_accessed = ((obs.size + act.size) * 4
                      + (w1o.size + w1a.size + w2b.size) * 2
                      + (b1c.size + b2c.size + w3c.size + b3s.size) * 4
                      + Bp * 4)

    rep = lambda i: (0, 0)  # replicated (weight / bias) blocks
    q2d = pl.pallas_call(
        qfunc_kernel,
        out_shape=jax.ShapeDtypeStruct((1, Bp), jnp.float32),
        grid_spec=pltpu.PrefetchScalarGridSpec(
            num_scalar_prefetch=0,
            grid=grid,
            in_specs=[
                pl.BlockSpec((bt, obs_dim), lambda i: (i, 0)),       # obs tile
                pl.BlockSpec((bt, act_dim), lambda i: (i, 0)),       # act tile
                pl.BlockSpec((h1, obs_dim), rep),                    # W1_obs
                pl.BlockSpec((h1, act_dim), rep),                    # W1_act
                pl.BlockSpec((h1, 1), rep),                          # b1
                pl.BlockSpec((h2, h1), rep),                         # W2
                pl.BlockSpec((h2, 1), rep),                          # b2
                pl.BlockSpec((h2, 1), rep),                          # w3 column
                pl.BlockSpec(memory_space=pltpu.MemorySpace.SMEM),   # b3 scalar
            ],
            out_specs=pl.BlockSpec((1, bt), lambda i: (0, i)),       # lane-dense q row
        ),
        compiler_params=pltpu.CompilerParams(
            dimension_semantics=("parallel",)),
        cost_estimate=pl.CostEstimate(flops=flops, transcendentals=0,
                                      bytes_accessed=bytes_accessed),
    )(obs, act, w1o, w1a, b1c, w2b, b2c, w3c, b3s)

    return q2d[0, :B]  # torch.squeeze(q, -1); always slice before any reduction


def init_params(key, obs_dim, act_dim, hidden_sizes):
    """nn.Linear-style init U(-1/sqrt(fan_in), 1/sqrt(fan_in)); weights in
    PyTorch-native (out_features, in_features) layout."""
    sizes = [obs_dim + act_dim] + list(hidden_sizes) + [1]
    keys = jax.random.split(key, 2 * (len(sizes) - 1))
    params = []
    for j in range(len(sizes) - 1):
        fan_in, fan_out = sizes[j], sizes[j + 1]
        bound = 1.0 / float(fan_in) ** 0.5
        w = jax.random.uniform(keys[2 * j], (fan_out, fan_in), jnp.float32, -bound, bound)
        b = jax.random.uniform(keys[2 * j + 1], (fan_out,), jnp.float32, -bound, bound)
        params += [w, b]
    return tuple(params)  # (w1, b1, w2, b2, w3, b3)


def reference_forward(obs, act, params):
    w1, b1, w2, b2, w3, b3 = params
    x = jnp.concatenate([obs, act], axis=-1)
    h = jnp.maximum(x @ w1.T + b1, 0.0)
    h = jnp.maximum(h @ w2.T + b2, 0.0)
    q = h @ w3.T + b3
    return jnp.squeeze(q, -1)


if __name__ == "__main__":
    key = jax.random.PRNGKey(0)
    k_param, *k_data = jax.random.split(key, 7)

    obs_dim, act_dim = 16, 16
    hidden_sizes = (32, 32)
    params = init_params(k_param, obs_dim, act_dim, hidden_sizes)
    prep = prepare_params(params, obs_dim)   # one-time bf16 cast / split / reshape

    # Case 1: small batch -> padded to one 128-wide lane tile, single grid step.
    B1 = 64
    obs1 = jax.random.normal(k_data[0], (B1, obs_dim), jnp.float32)
    act1 = jax.random.normal(k_data[1], (B1, act_dim), jnp.float32)
    q1 = jax.block_until_ready(mlp_qfunction(obs1, act1, prep))
    assert q1.shape == (B1,)
    assert jnp.allclose(q1, reference_forward(obs1, act1, params), atol=2e-2, rtol=2e-2)

    # Case 2: awkward batch -> padded only to 384 (not a full 512 tile), single step.
    B2 = 300
    obs2 = jax.random.normal(k_data[2], (B2, obs_dim), jnp.float32)
    act2 = jax.random.normal(k_data[3], (B2, act_dim), jnp.float32)
    q2 = jax.block_until_ready(mlp_qfunction(obs2, act2, prep))
    assert q2.shape == (B2,)
    assert jnp.allclose(q2, reference_forward(obs2, act2, params), atol=2e-2, rtol=2e-2)

    # Case 3: large batch -> bt=512, even 2-step "parallel" grid (v7x 2-TC friendly).
    B3 = 1024
    obs3 = jax.random.normal(k_data[4], (B3, obs_dim), jnp.float32)
    act3 = jax.random.normal(k_data[5], (B3, act_dim), jnp.float32)
    q3 = jax.block_until_ready(mlp_qfunction(obs3, act3, prep))
    assert q3.shape == (B3,)
    assert jnp.allclose(q3, reference_forward(obs3, act3, params), atol=2e-2, rtol=2e-2)

    print("KERNEL_OK")
</pallas_src>

<mosaic_0001>
module attributes {stable_mosaic.version = 11 : i64} {
  func.func @qfunc_kernel(%arg0: i32, %arg1: memref<128x16xf32, #tpu.memory_space<vmem>>, %arg2: memref<128x16xf32, #tpu.memory_space<vmem>>, %arg3: memref<32x16xbf16, #tpu.memory_space<vmem>>, %arg4: memref<32x16xbf16, #tpu.memory_space<vmem>>, %arg5: memref<32x1xf32, #tpu.memory_space<vmem>>, %arg6: memref<32x32xbf16, #tpu.memory_space<vmem>>, %arg7: memref<32x1xf32, #tpu.memory_space<vmem>>, %arg8: memref<32x1xf32, #tpu.memory_space<vmem>>, %arg9: memref<1xf32, #tpu.memory_space<smem>>, %arg10: memref<1x128xf32, #tpu.memory_space<vmem>>) attributes {dimension_semantics = [#tpu.dimension_semantics<parallel>], iteration_bounds = array<i64: 1>, scalar_prefetch = 0 : i64, scratch_operands = 0 : i64, tpu.core_type = #tpu.core_type<tc>, window_params = [{transform_indices = @transform_0, window_bounds = array<i64: 128, 16>}, {transform_indices = @transform_1, window_bounds = array<i64: 128, 16>}, {pipeline_mode = #tpu.pipeline_mode<synchronous>, transform_indices = @transform_2, window_bounds = array<i64: 32, 16>}, {pipeline_mode = #tpu.pipeline_mode<synchronous>, transform_indices = @transform_3, window_bounds = array<i64: 32, 16>}, {pipeline_mode = #tpu.pipeline_mode<synchronous>, transform_indices = @transform_4, window_bounds = array<i64: 32, 1>}, {pipeline_mode = #tpu.pipeline_mode<synchronous>, transform_indices = @transform_5, window_bounds = array<i64: 32, 32>}, {pipeline_mode = #tpu.pipeline_mode<synchronous>, transform_indices = @transform_6, window_bounds = array<i64: 32, 1>}, {pipeline_mode = #tpu.pipeline_mode<synchronous>, transform_indices = @transform_7, window_bounds = array<i64: 32, 1>}, {transform_indices = @transform_8, window_bounds = array<i64: 1>}, {transform_indices = @transform_9, window_bounds = array<i64: 1, 128>}]} {
    %c0 = arith.constant 0 : index
    %c0_0 = arith.constant 0 : index
    %0 = vector.load %arg1[%c0, %c0_0] : memref<128x16xf32, #tpu.memory_space<vmem>>, vector<128x16xf32>
    %1 = arith.truncf %0 : vector<128x16xf32> to vector<128x16xbf16>
    %c0_1 = arith.constant 0 : index
    %c0_2 = arith.constant 0 : index
    %2 = vector.load %arg2[%c0_1, %c0_2] : memref<128x16xf32, #tpu.memory_space<vmem>>, vector<128x16xf32>
    %3 = arith.truncf %2 : vector<128x16xf32> to vector<128x16xbf16>
    %c0_3 = arith.constant 0 : index
    %c0_4 = arith.constant 0 : index
    %4 = vector.load %arg3[%c0_3, %c0_4] : memref<32x16xbf16, #tpu.memory_space<vmem>>, vector<32x16xbf16>
    %cst = arith.constant dense<0.000000e+00> : vector<32x128xf32>
    %5 = tpu.matmul %4, %1, %cst {dimension_numbers = #tpu.dot_dimension_numbers<[1], [1], [0], [0], [0, 0, 1, 0], [], []>} : vector<32x16xbf16>, vector<128x16xbf16>, vector<32x128xf32> -> vector<32x128xf32>
    %c0_5 = arith.constant 0 : index
    %c0_6 = arith.constant 0 : index
    %6 = vector.load %arg4[%c0_5, %c0_6] : memref<32x16xbf16, #tpu.memory_space<vmem>>, vector<32x16xbf16>
    %cst_7 = arith.constant dense<0.000000e+00> : vector<32x128xf32>
    %7 = tpu.matmul %6, %3, %cst_7 {dimension_numbers = #tpu.dot_dimension_numbers<[1], [1], [0], [0], [0, 0, 1, 0], [], []>} : vector<32x16xbf16>, vector<128x16xbf16>, vector<32x128xf32> -> vector<32x128xf32>
    %8 = arith.addf %5, %7 : vector<32x128xf32>
    %c0_8 = arith.constant 0 : index
    %c0_9 = arith.constant 0 : index
    %9 = vector.load %arg5[%c0_8, %c0_9] : memref<32x1xf32, #tpu.memory_space<vmem>>, vector<32x1xf32>
    %10 = vector.broadcast %9 : vector<32x1xf32> to vector<32x128xf32>
    %11 = arith.addf %8, %10 : vector<32x128xf32>
    %cst_10 = arith.constant 0.000000e+00 : f32
    %12 = vector.broadcast %cst_10 : f32 to vector<32x128xf32>
    %13 = arith.maximumf %11, %12 : vector<32x128xf32>
    %c0_11 = arith.constant 0 : index
    %c0_12 = arith.constant 0 : index
    %14 = vector.load %arg6[%c0_11, %c0_12] : memref<32x32xbf16, #tpu.memory_space<vmem>>, vector<32x32xbf16>
    %15 = arith.truncf %13 : vector<32x128xf32> to vector<32x128xbf16>
    %cst_13 = arith.constant dense<0.000000e+00> : vector<32x128xf32>
    %16 = tpu.matmul %14, %15, %cst_13 {dimension_numbers = #tpu.dot_dimension_numbers<[1], [0], [0], [1], [0, 0, 1, 1], [], []>} : vector<32x32xbf16>, vector<32x128xbf16>, vector<32x128xf32> -> vector<32x128xf32>
    %c0_14 = arith.constant 0 : index
    %c0_15 = arith.constant 0 : index
    %17 = vector.load %arg7[%c0_14, %c0_15] : memref<32x1xf32, #tpu.memory_space<vmem>>, vector<32x1xf32>
    %18 = vector.broadcast %17 : vector<32x1xf32> to vector<32x128xf32>
    %19 = arith.addf %16, %18 : vector<32x128xf32>
    %cst_16 = arith.constant 0.000000e+00 : f32
    %20 = vector.broadcast %cst_16 : f32 to vector<32x128xf32>
    %21 = arith.maximumf %19, %20 : vector<32x128xf32>
    %c0_17 = arith.constant 0 : index
    %c0_18 = arith.constant 0 : index
    %22 = vector.load %arg8[%c0_17, %c0_18] : memref<32x1xf32, #tpu.memory_space<vmem>>, vector<32x1xf32>
    %23 = vector.broadcast %22 : vector<32x1xf32> to vector<32x128xf32>
    %24 = arith.mulf %21, %23 : vector<32x128xf32>
    %cst_19 = arith.constant dense<0.000000e+00> : vector<128xf32>
    %25 = vector.multi_reduction <add>, %24, %cst_19 [0] : vector<32x128xf32> to vector<128xf32>
    %26 = vector.shape_cast %25 : vector<128xf32> to vector<1x128xf32>
    %c0_20 = arith.constant 0 : index
    %27 = memref.load %arg9[%c0_20] : memref<1xf32, #tpu.memory_space<smem>>
    %28 = vector.broadcast %27 : f32 to vector<1x128xf32>
    %29 = arith.addf %26, %28 : vector<1x128xf32>
    %c0_21 = arith.constant 0 : index
    %c0_22 = arith.constant 0 : index
    %30 = vector.load %arg10[%c0_21, %c0_22] : memref<1x128xf32, #tpu.memory_space<vmem>>, vector<1x128xf32>
    tpu.vector_store %arg10[%c0_21, %c0_22], %29 {strides = array<i32>} : memref<1x128xf32, #tpu.memory_space<vmem>>, vector<1x128xf32>,
    return
  }
  func.func @transform_0(%arg0: i32) -> (i32, i32) {
    %c0_i32 = arith.constant 0 : i32
    %c0_i32_0 = arith.constant 0 : i32
    return %arg0, %c0_i32 : i32, i32
  }
  func.func @transform_1(%arg0: i32) -> (i32, i32) {
    %c0_i32 = arith.constant 0 : i32
    %c0_i32_0 = arith.constant 0 : i32
    return %arg0, %c0_i32 : i32, i32
  }
  func.func @transform_2(%arg0: i32) -> (i32, i32) {
    %c0_i32 = arith.constant 0 : i32
    %c0_i32_0 = arith.constant 0 : i32
    %c0_i32_1 = arith.constant 0 : i32
    return %c0_i32, %c0_i32_0 : i32, i32
  }
  func.func @transform_3(%arg0: i32) -> (i32, i32) {
    %c0_i32 = arith.constant 0 : i32
    %c0_i32_0 = arith.constant 0 : i32
    %c0_i32_1 = arith.constant 0 : i32
    return %c0_i32, %c0_i32_0 : i32, i32
  }
  func.func @transform_4(%arg0: i32) -> (i32, i32) {
    %c0_i32 = arith.constant 0 : i32
    %c0_i32_0 = arith.constant 0 : i32
    %c0_i32_1 = arith.constant 0 : i32
    return %c0_i32, %c0_i32_0 : i32, i32
  }
  func.func @transform_5(%arg0: i32) -> (i32, i32) {
    %c0_i32 = arith.constant 0 : i32
    %c0_i32_0 = arith.constant 0 : i32
    %c0_i32_1 = arith.constant 0 : i32
    return %c0_i32, %c0_i32_0 : i32, i32
  }
  func.func @transform_6(%arg0: i32) -> (i32, i32) {
    %c0_i32 = arith.constant 0 : i32
    %c0_i32_0 = arith.constant 0 : i32
    %c0_i32_1 = arith.constant 0 : i32
    return %c0_i32, %c0_i32_0 : i32, i32
  }
  func.func @transform_7(%arg0: i32) -> (i32, i32) {
    %c0_i32 = arith.constant 0 : i32
    %c0_i32_0 = arith.constant 0 : i32
    %c0_i32_1 = arith.constant 0 : i32
    return %c0_i32, %c0_i32_0 : i32, i32
  }
  func.func @transform_8(%arg0: i32) -> i32 {
    %c0_i32 = arith.constant 0 : i32
    %c0_i32_0 = arith.constant 0 : i32
    return %c0_i32 : i32
  }
  func.func @transform_9(%arg0: i32) -> (i32, i32) {
    %c0_i32 = arith.constant 0 : i32
    %c0_i32_0 = arith.constant 0 : i32
    return %c0_i32, %arg0 : i32, i32
  }
}

</mosaic_0001>

<bundles_post_ra>
// kernel: mlp_qfunction.1
= control target key start
LH: loop header
LB: loop body
LE: loop exit
PB: predicated region body
PF: predicated region fallthrough
CT: control target
= control target key end

     0   :  { %vm100_vm0 = vcmask 130048   ;;  %v559_v3 = vmov 0   ;;  %vm341_vm1 = vcmask 261120   ;;  %s804_s1 = inlined_call_operand.vmem [shape: f32[128,16], index: 1, kind: input, shape index: {}]   ;;  %s805_s0 = inlined_call_operand.vmem [shape: f32[128,16], index: 0, kind: input, shape index: {}]   ;;  %s806_s3 = inlined_call_operand.vmem [shape: bf16[32,16], index: 3, kind: input, shape index: {}]   ;;  %s807_s2 = inlined_call_operand.vmem [shape: bf16[32,16], index: 2, kind: input, shape index: {}]   ;;  %s808_s4 = inlined_call_operand.vmem [shape: f32[32,1], index: 4, kind: input, shape index: {}]   ;;  %s809_s6 = inlined_call_operand.vmem [shape: f32[32,1], index: 6, kind: input, shape index: {}]   ;;  %s810_s7 = inlined_call_operand.vmem [shape: f32[32,1], index: 7, kind: input, shape index: {}]   ;;  %s811_s5 = inlined_call_operand.vmem [shape: bf16[32,32], index: 5, kind: input, shape index: {}]   ;;  %s812_s8 = inlined_call_operand.<no memory space> [shape: f32[1], index: 8, kind: input, shape index: {}]   ;;  %s813_s9 = inlined_call_operand.vmem [shape: f32[1,128], index: 9, kind: output, shape index: {}]  }
   0x1   :  { %v58_v0 = vld [vmem:[%s804_s1] sm:$0xff]  ;;  %v59_v1 = vld [vmem:[%s804_s1 + $0x8] sm:$0xff]  ;;  %551 = vset.pattern.permute.xlu0 %v559_v3  ;;  %552 = vset.pattern.permute.xlu1 %v559_v3  ;;  %v60_v6 = vld [vmem:[%s804_s1 + $0x10] sm:$0xff] }
   0x2   :  { %v34_v2 = vld [vmem:[%s805_s0] sm:$0xff]  ;;  %v74_v4 = vpack.c.bf16 %v59_v1, %v58_v0  ;;  %v35_v5 = vld [vmem:[%s805_s0 + $0x8] sm:$0xff]  ;;  %v61_v7 = vld [vmem:[%s804_s1 + $0x18] sm:$0xff] }
   0x3   :  { %v50_v8 = vpack.c.bf16 %v35_v5, %v34_v2  ;;  %v75_v9 = vpack.c.bf16 %v61_v7, %v60_v6  ;;  %v36_v10 = vld [vmem:[%s805_s0 + $0x10] sm:$0xff]  ;;  %v37_v11 = vld [vmem:[%s805_s0 + $0x18] sm:$0xff]  ;;  %v62_v15 = vld [vmem:[%s804_s1 + $0x20] sm:$0xff] }
   0x4   :  { %534 = vmatprep.subr.msk.bf16.mxu1 %vm100_vm0, %v74_v4  ;;  %v108_v12 = vsel %vm100_vm0, %v74_v4, 0  ;;  %v51_v13 = vpack.c.bf16 %v37_v11, %v36_v10  ;;  %v63_v16 = vld [vmem:[%s804_s1 + $0x28] sm:$0xff]  ;;  %v38_v17 = vld [vmem:[%s805_s0 + $0x20] sm:$0xff]  ;;  %v64_v24 = vld [vmem:[%s804_s1 + $0x30] sm:$0xff] }
   0x5   :  { %542 = vmatprep.subr.msk.bf16.mxu0 %vm100_vm0, %v50_v8  ;;  %483 = vmatpush3.bf16.xpose.msra.mxu1 %v108_v12  ;;  %v197_v14 = vsel %vm100_vm0, %v50_v8, 0  ;;  %v39_v18 = vld [vmem:[%s805_s0 + $0x28] sm:$0xff]  ;;  %v111_v19 = vsel %vm100_vm0, %v75_v9, 0  ;;  %v76_v20 = vpack.c.bf16 %v63_v16, %v62_v15  ;;  %v553_v23 = vld [vmem:[%s806_s3] sm:$0xff]   ;;  %v65_v26 = vld [vmem:[%s804_s1 + $0x38] sm:$0xff] }
   0x6   :  { %503 = vmatpush3.bf16.xpose.msra.mxu0 %v197_v14  ;;  %535 = vmatprep.subr.msk.bf16.mxu1 %vm100_vm0, %v75_v9  ;;  %v200_v21 = vsel %vm100_vm0, %v51_v13, 0  ;;  %v52_v22 = vpack.c.bf16 %v39_v18, %v38_v17  ;;  %v554_v25 = vld [vmem:[%s807_s2] sm:$0xff]   ;;  %v40_v28 = vld [vmem:[%s805_s0 + $0x30] sm:$0xff]  ;;  %v41_v29 = vld [vmem:[%s805_s0 + $0x38] sm:$0xff]  ;;  %v77_v33 = vpack.c.bf16 %v65_v26, %v64_v24 }
   0x7   :  { %543 = vmatprep.subr.msk.bf16.mxu0 %vm100_vm0, %v51_v13  ;;  %498 = vmatprep.mubr.msk.bf16.mxu1 %vm100_vm0, %v553_v23  ;;  %v269_v27 = vld [vmem:[%s808_s4] sm:$0xff]  ;;  %v271_v30 = vld [vmem:[%s808_s4 + $0x10] sm:$0xff]  ;;  %v270_v31 = vld [vmem:[%s808_s4 + $0x8] sm:$0xff]  ;;  %v114_v32 = vsel %vm100_vm0, %v76_v20, 0  ;;  %v53_v36 = vpack.c.bf16 %v41_v29, %v40_v28 }
   0x8   :  { %518 = vmatprep.mubr.msk.bf16.mxu0 %vm100_vm0, %v554_v25  ;;  %275 = vperm.xlu0 %551, %v269_v27   ;;  %v272_v34 = vld [vmem:[%s808_s4 + $0x18] sm:$0xff]  ;;  %v203_v35 = vsel %vm100_vm0, %v52_v22, 0  ;;  %v307_v37 = vld [vmem:[%s809_s6] sm:$0xff]  ;;  %v308_v38 = vld [vmem:[%s809_s6 + $0x8] sm:$0xff]  ;;  %v117_v44 = vsel %vm100_vm0, %v77_v33, 0 }
   0x9   :  { %285 = vperm.xlu1 %552, %v271_v30   ;;  %v66_v39 = vld [vmem:[%s804_s1 + $0x40] sm:$0xff]  ;;  %v67_v40 = vld [vmem:[%s804_s1 + $0x48] sm:$0xff]  ;;  %v309_v43 = vld [vmem:[%s809_s6 + $0x10] sm:$0xff]  ;;  %v206_v47 = vsel %vm100_vm0, %v53_v36, 0 }
   0xa   :  { %v42_v41 = vld [vmem:[%s805_s0 + $0x40] sm:$0xff]  ;;  %v43_v42 = vld [vmem:[%s805_s0 + $0x48] sm:$0xff]  ;;  %v78_v45 = vpack.c.bf16 %v67_v40, %v66_v39  ;;  %v310_v46 = vld [vmem:[%s809_s6 + $0x18] sm:$0xff] }
   0xb   :  { %v54_v48 = vpack.c.bf16 %v43_v42, %v42_v41  ;;  %v401_v49 = vld [vmem:[%s810_s7] sm:$0xff]  ;;  %v402_v50 = vld [vmem:[%s810_s7 + $0x8] sm:$0xff]  ;;  %v68_v51 = vld [vmem:[%s804_s1 + $0x50] sm:$0xff] }
   0xc   :  { %280 = vperm.xlu0 %551, %v270_v31   ;;  %v69_v52 = vld [vmem:[%s804_s1 + $0x58] sm:$0xff]  ;;  %v44_v53 = vld [vmem:[%s805_s0 + $0x50] sm:$0xff]  ;;  %v120_v56 = vsel %vm100_vm0, %v78_v45, 0  ;;  %v70_v61 = vld [vmem:[%s804_s1 + $0x60] sm:$0xff] }
   0xd   :  { %485 = vmatpush3.bf16.xpose.msra.mxu1 %v111_v19  ;;  %290 = vperm.xlu1 %552, %v272_v34   ;;  %v45_v54 = vld [vmem:[%s805_s0 + $0x58] sm:$0xff]  ;;  %v403_v55 = vld [vmem:[%s810_s7 + $0x10] sm:$0xff]  ;;  %v79_v57 = vpack.c.bf16 %v69_v52, %v68_v51  ;;  %v209_v59 = vsel %vm100_vm0, %v54_v48, 0  ;;  %v71_v62 = vld [vmem:[%s804_s1 + $0x68] sm:$0xff] }
   0xe   :  { %505 = vmatpush3.bf16.xpose.msra.mxu0 %v200_v21  ;;  %536 = vmatprep.subr.msk.bf16.mxu1 %vm100_vm0, %v76_v20  ;;  %v404_v58 = vld [vmem:[%s810_s7 + $0x18] sm:$0xff]  ;;  %v55_v60 = vpack.c.bf16 %v45_v54, %v44_v53  ;;  %v46_v63 = vld [vmem:[%s805_s0 + $0x60] sm:$0xff]  ;;  %v47_v0 = vld [vmem:[%s805_s0 + $0x68] sm:$0xff]  ;;  %v80_v2 = vpack.c.bf16 %v71_v62, %v70_v61 }
   0xf   :  { %544 = vmatprep.subr.msk.bf16.mxu0 %vm100_vm0, %v52_v22  ;;  %v123_v1 = vsel %vm100_vm0, %v79_v57, 0  ;;  %v56_v4 = vpack.c.bf16 %v47_v0, %v46_v63  ;;  %v72_v5 = vld [vmem:[%s804_s1 + $0x70] sm:$0xff]  ;;  %v73_v6 = vld [vmem:[%s804_s1 + $0x78] sm:$0xff]  ;;  %v555_v15 = vld [vmem:[%s806_s3 + $0x8] sm:$0xff]  }
  0x10   :  { %313 = vperm.xlu0 %551, %v307_v37   ;;  %v212_v3 = vsel %vm100_vm0, %v55_v60, 0  ;;  %v48_v7 = vld [vmem:[%s805_s0 + $0x70] sm:$0xff]  ;;  %v49_v8 = vld [vmem:[%s805_s0 + $0x78] sm:$0xff]  ;;  %v126_v9 = vsel %vm100_vm0, %v80_v2, 0  ;;  %v81_v10 = vpack.c.bf16 %v73_v6, %v72_v5  ;;  %v556_v16 = vld [vmem:[%s807_s2 + $0x8] sm:$0xff]  }
  0x11   :  { %318 = vperm.xlu1 %552, %v308_v38   ;;  %v215_v11 = vsel %vm100_vm0, %v56_v4, 0  ;;  %v57_v12 = vpack.c.bf16 %v49_v8, %v48_v7  ;;  %v557_v17 = vld [vmem:[%s811_s5] sm:$0xff]  }
  0x12   :  { %v129_v13 = vsel %vm100_vm0, %v81_v10, 0 }
  0x13   :  { %v218_v14 = vsel %vm100_vm0, %v57_v12, 0 }
  0x14   :  { %323 = vperm.xlu0 %551, %v309_v43  }
  0x15   :  { %487 = vmatpush3.bf16.xpose.msra.mxu1 %v114_v32  ;;  %328 = vperm.xlu1 %552, %v310_v46  }
  0x16   :  { %507 = vmatpush3.bf16.xpose.msra.mxu0 %v203_v35  ;;  %537 = vmatprep.subr.msk.bf16.mxu1 %vm100_vm0, %v77_v33 }
  0x17   :  { %545 = vmatprep.subr.msk.bf16.mxu0 %vm100_vm0, %v53_v36 }
  0x18   :  { %407 = vperm.xlu0 %551, %v401_v49  }
  0x19   :  { %412 = vperm.xlu1 %552, %v402_v50  }
  0x1c   :  { %417 = vperm.xlu0 %551, %v403_v55  }
  0x1d   :  { %489 = vmatpush3.bf16.xpose.msra.mxu1 %v117_v44  ;;  %422 = vperm.xlu1 %552, %v404_v58   ;;  %v558_v44 = vld [vmem:[%s811_s5 + $0x8] sm:$0xff]  }
  0x1e   :  { %509 = vmatpush3.bf16.xpose.msra.mxu0 %v206_v47  ;;  %538 = vmatprep.subr.msk.bf16.mxu1 %vm100_vm0, %v78_v45 }
  0x1f   :  { %546 = vmatprep.subr.msk.bf16.mxu0 %vm100_vm0, %v54_v48 }
  0x25   :  { %491 = vmatpush3.bf16.xpose.msra.mxu1 %v120_v56 }
  0x26   :  { %511 = vmatpush3.bf16.xpose.msra.mxu0 %v209_v59  ;;  %539 = vmatprep.subr.msk.bf16.mxu1 %vm100_vm0, %v79_v57 }
  0x27   :  { %547 = vmatprep.subr.msk.bf16.mxu0 %vm100_vm0, %v55_v60 }
  0x2d   :  { %493 = vmatpush3.bf16.xpose.msra.mxu1 %v123_v1 }
  0x2e   :  { %513 = vmatpush3.bf16.xpose.msra.mxu0 %v212_v3  ;;  %540 = vmatprep.subr.msk.bf16.mxu1 %vm100_vm0, %v80_v2 }
  0x2f   :  { %548 = vmatprep.subr.msk.bf16.mxu0 %vm100_vm0, %v56_v4 }
  0x35   :  { %495 = vmatpush3.bf16.xpose.msra.mxu1 %v126_v9 }
  0x36   :  { %515 = vmatpush3.bf16.xpose.msra.mxu0 %v215_v11  ;;  %541 = vmatprep.subr.msk.bf16.mxu1 %vm100_vm0, %v81_v10 }
  0x37   :  { %549 = vmatprep.subr.msk.bf16.mxu0 %vm100_vm0, %v57_v12 }
  0x3d   :  { %497 = vmatpush3.bf16.xpose.msra.mxu1 %v129_v13  ;;  %v439_v13 = vstv %s812_s8 }
  0x3e   :  { %517 = vmatpush3.bf16.xpose.msra.mxu0 %v218_v14 }
  0x44   :  { %499 = vmatmul.mubr.msk.bf16.vlgmr.msra.gmra.mrb[0].mxu1 %vm100_vm0, %v555_v15 }
  0x45   :  { %519 = vmatmul.mubr.msk.bf16.vlgmr.msra.gmra.mrb[0].mxu0 %vm100_vm0, %v556_v16  ;;  %526 = vmatprep.mubr.msk.bf16.mxu1 %vm341_vm1, %v557_v17 }
  0x87   :  { %v276_v19 = vpop.permute.xlu0 %275 }
  0x88   :  { %v286_v18 = vpop.permute.xlu1 %285 }
  0x8b   :  { %v281_v35 = vpop.permute.xlu0 %280 }
  0x8c   :  { %v291_v32 = vpop.permute.xlu1 %290 }
  0x8f   :  { %v314_v45 = vpop.permute.xlu0 %313 }
  0x90   :  { %v319_v46 = vpop.permute.xlu1 %318 }
  0x93   :  { %v324_v47 = vpop.permute.xlu0 %323 }
  0x94   :  { %v329_v48 = vpop.permute.xlu1 %328 }
  0x97   :  { %v408_v54 = vpop.permute.xlu0 %407 }
  0x98   :  { %v413_v59 = vpop.permute.xlu1 %412 }
  0x9b   :  { %v418_v1 = vpop.permute.xlu0 %417 }
  0x9c   :  { %v423_v4 = vpop.permute.xlu1 %422 }
 0x117   :  { %v500_v20 = vpop.f32.mrb[0].mxu1 }
 0x118   :  { %v520_v21 = vpop.f32.mrb[0].mxu0  ;;  %v165_v22 = vpop.f32.mrb[1].mxu1 }
 0x119   :  { %v263_v23 = vadd.f32 %v520_v21, %v500_v20  ;;  %v254_v24 = vpop.f32.mrb[1].mxu0  ;;  %v501_v25 = vpop.f32.mrb[2].mxu1 }
 0x11a   :  { %v255_v26 = vadd.f32 %v254_v24, %v165_v22  ;;  %v521_v27 = vpop.f32.mrb[2].mxu0  ;;  %v168_v28 = vpop.f32.mrb[3].mxu1 }
 0x11b   :  { %v295_v29 = vadd.f32 %v286_v18, %v263_v23  ;;  %v266_v30 = vadd.f32 %v521_v27, %v501_v25  ;;  %v257_v31 = vpop.f32.mrb[3].mxu0 }
 0x11c   :  { %v293_v33 = vadd.f32 %v276_v19, %v255_v26  ;;  %v258_v34 = vadd.f32 %v257_v31, %v168_v28 }
 0x11d   :  { %v296_v36 = vadd.f32 %v291_v32, %v266_v30  ;;  %v299_v38 = vmax.f32 %v295_v29, 0.0 }
 0x11e   :  { %v294_v37 = vadd.f32 %v281_v35, %v258_v34  ;;  %v297_v40 = vmax.f32 %v293_v33, 0.0 }
 0x11f   :  { %v300_v39 = vmax.f32 %v296_v36, 0.0 }
 0x120   :  { %v298_v41 = vmax.f32 %v294_v37, 0.0 }
 0x121   :  { %v306_v42 = vpack.c.bf16 %v300_v39, %v299_v38 }
 0x122   :  { %v305_v43 = vpack.c.bf16 %v298_v41, %v297_v40 }
 0x124   :  { %522 = vmatprep.subr.bf16.mxu1 %v305_v43 }
 0x125   :  { %523 = vmatpush3.bf16.msra.mxu1 %v305_v43 }
 0x126   :  { %524 = vmatprep.subr.bf16.mxu1 %v306_v42 }
 0x129   :  { %525 = vmatpush3.bf16.msra.mxu1 %v306_v42 }
 0x12c   :  { %527 = vmatmul.mubr.msk.bf16.vlgmr.msra.gmra.mrb[4].mxu1 %vm341_vm1, %v558_v44 }
 0x1ff   :  { %v528_v49 = vpop.f32.mrb[4].mxu1 }
 0x200   :  { %v382_v50 = vpop.f32.mrb[5].mxu1  ;;  %v391_v51 = vadd.f32 %v528_v49, %v324_v47 }
 0x201   :  { %v383_v52 = vadd.f32 %v382_v50, %v314_v45  ;;  %v529_v53 = vpop.f32.mrb[6].mxu1 }
 0x202   :  { %v385_v55 = vpop.f32.mrb[7].mxu1  ;;  %v394_v57 = vadd.f32 %v529_v53, %v329_v48  ;;  %v399_v60 = vmax.f32 %v391_v51, 0.0 }
 0x203   :  { %v397_v56 = vmax.f32 %v383_v52, 0.0  ;;  %v386_v58 = vadd.f32 %v385_v55, %v319_v46 }
 0x204   :  { %v400_v63 = vmax.f32 %v394_v57, 0.0  ;;  %v427_v2 = vmul.f32 %v418_v1, %v399_v60 }
 0x205   :  { %v398_v61 = vmax.f32 %v386_v58, 0.0  ;;  %v425_v62 = vmul.f32 %v408_v54, %v397_v56 }
 0x206   :  { %v428_v5 = vmul.f32 %v423_v4, %v400_v63 }
 0x207   :  { %v426_v0 = vmul.f32 %v413_v59, %v398_v61 }
 0x209   :  { %v429_v3 = vadd.f32 %v426_v0, %v425_v62 }
 0x20b   :  { %v430_v6 = vadd.f32 %v429_v3, %v427_v2 }
 0x20d   :  { %v431_v7 = vadd.f32 %v430_v6, %v428_v5 }
 0x20f   :  { %v432_v8 = vrot.slane %v431_v7, 4 }
 0x211   :  { %v433_v9 = vadd.f32 %v432_v8, %v431_v7 }
 0x213   :  { %v434_v10 = vrot.slane %v433_v9, 2 }
 0x215   :  { %v435_v11 = vadd.f32 %v434_v10, %v433_v9 }
 0x217   :  { %v436_v12 = vrot.slane %v435_v11, 1 }
 0x219   :  { %v437_v14 = vadd.f32 %v436_v12, %v435_v11 }
 0x21b   :  { %v440_v15 = vadd.f32 %v439_v13, %v437_v14 }
 0x21d   :  { %441 = vst [vmem:[%s813_s9] sm:$0x1] %v440_v15 }

</bundles_post_ra>
